<compile_context>
chip_gen: v7x
topology: tpu7x:2x2x1
jax: 0.10.0
libtpu: 0.0.40
codegen_flags: <defaults>
</compile_context>

<pallas_src>
import jax
import jax.numpy as jnp
import numpy as np
from jax import lax
from jax.experimental import pallas as pl
from jax.experimental.pallas import tpu as pltpu


LN_EPS = 0.8        # nn.LayerNorm(down_dim // 2, 0.8) -> eps = 0.8
LEAKY_SLOPE = 0.2   # nn.LeakyReLU(0.2)
TILE_B = 128        # batch tile: multiple of 8 sublanes & MXU M (256 also fine on v6e/v7x)


def _disc_fc_kernel(x_ref, w1_ref, ln_ref, w2_ref, b2_ref, o_ref):
    """One batch tile of the fused FC head.

    x_ref  : (TILE_B, F)    bf16  flattened features
    w1_ref : (F, H)         bf16  Linear-1 weight (transposed vs torch (H, F))
    ln_ref : (3, H)         f32   rows: [b1, ln_gamma, ln_beta]
    w2_ref : (1, H)         f32   Linear-2 weight (torch layout, out_features=1)
    b2_ref : (1, 1)         f32   Linear-2 bias (SMEM scalar)
    o_ref  : (1, 1, TILE_B) f32   lane-dense per-tile output
    """
    # Linear 1 on the MXU (bf16 inputs, f32 accumulation).
    h = jnp.dot(x_ref[...], w1_ref[...], preferred_element_type=jnp.float32)
    h = h + ln_ref[0:1, :]

    # LayerNorm over the feature dim (biased variance, like torch), eps = 0.8.
    mean = jnp.mean(h, axis=-1, keepdims=True)
    c = h - mean
    var = jnp.mean(c * c, axis=-1, keepdims=True)
    hn = c * lax.rsqrt(var + LN_EPS)
    hn = hn * ln_ref[1:2, :] + ln_ref[2:3, :]

    # LeakyReLU(0.2).
    hn = jnp.where(hn >= 0.0, hn, LEAKY_SLOPE * hn)

    # Linear 2 (H -> 1): VPU multiply + XLU lane reduction instead of an N=1 MXU matmul.
    row = jnp.sum(hn * w2_ref[...], axis=-1) + b2_ref[0, 0]   # (TILE_B,)
    o_ref[0, 0, :] = row


def discriminator_forward(x_nchw, params):
    """x_nchw: (B, C, H, W) float32. Returns (B, 1) float32 == Discriminator.forward."""
    w1_t, b1, gamma, beta, w2_row, b2 = params
    b = x_nchw.shape[0]
    x = x_nchw.reshape(b, -1)                        # .view(B, -1)
    feat = x.shape[1]
    hid = w1_t.shape[1]
    assert feat == w1_t.shape[0], "flattened feature dim must equal down_dim"

    # Pad batch to a multiple of TILE_B and stream it tile-by-tile.
    num_tiles = pl.cdiv(b, TILE_B)
    padded_b = num_tiles * TILE_B
    x_bf = x.astype(jnp.bfloat16)
    if padded_b != b:
        x_bf = jnp.pad(x_bf, ((0, padded_b - b), (0, 0)))

    w1_bf = w1_t.astype(jnp.bfloat16)
    ln_params = jnp.stack([b1, gamma, beta], axis=0).astype(jnp.float32)   # (3, H)
    w2_op = w2_row.reshape(1, hid).astype(jnp.float32)
    b2_op = b2.reshape(1, 1).astype(jnp.float32)

    flops = 2 * padded_b * feat * hid + 10 * padded_b * hid
    bytes_accessed = (padded_b * feat * 2 + feat * hid * 2
                      + (3 * hid + hid + 1) * 4 + padded_b * 4)

    out = pl.pallas_call(
        _disc_fc_kernel,
        out_shape=jax.ShapeDtypeStruct((num_tiles, 1, TILE_B), jnp.float32),
        grid=(num_tiles,),
        in_specs=[
            pl.BlockSpec((TILE_B, feat), lambda i: (i, 0)),        # streamed activations
            pl.BlockSpec((feat, hid), lambda i: (0, 0)),           # resident W1
            pl.BlockSpec((3, hid), lambda i: (0, 0)),              # resident b1/gamma/beta
            pl.BlockSpec((1, hid), lambda i: (0, 0)),              # resident W2 row
            pl.BlockSpec((1, 1), lambda i: (0, 0),
                         memory_space=pltpu.MemorySpace.SMEM),     # b2 scalar
        ],
        out_specs=pl.BlockSpec((1, 1, TILE_B), lambda i: (i, 0, 0)),
        compiler_params=pltpu.CompilerParams(
            dimension_semantics=("parallel",)),
        cost_estimate=pl.CostEstimate(
            flops=flops, transcendentals=padded_b, bytes_accessed=bytes_accessed),
    )(x_bf, w1_bf, ln_params, w2_op, b2_op)

    return out.reshape(padded_b)[:b].reshape(b, 1)


def make_params(down_dim, key):
    """Deterministic synthetic parameters matching the module's init scheme:
    Linear weights ~ N(0, 0.02); LayerNorm keeps default gamma=1, beta=0."""
    hidden = down_dim // 2
    k1, k2, k3, k4 = jax.random.split(key, 4)
    # torch stores Linear weight as (out, in); keep Linear-1 transposed as (in, out).
    w1_t = (0.02 * jax.random.normal(k1, (hidden, down_dim), jnp.float32)).T
    b1 = 0.02 * jax.random.normal(k2, (hidden,), jnp.float32)
    gamma = jnp.ones((hidden,), jnp.float32)
    beta = jnp.zeros((hidden,), jnp.float32)
    w2_row = 0.02 * jax.random.normal(k3, (1, hidden), jnp.float32)   # torch (out=1, in=H)
    b2 = 0.02 * jax.random.normal(k4, (1, 1), jnp.float32)
    return (w1_t, b1, gamma, beta, w2_row, b2)


def _reference(x_nchw, params):
    """Plain-JAX reference (same bf16 MXU inputs, f32 elementwise math)."""
    w1_t, b1, gamma, beta, w2_row, b2 = params
    x = x_nchw.reshape(x_nchw.shape[0], -1)
    h = jnp.dot(x.astype(jnp.bfloat16), w1_t.astype(jnp.bfloat16),
                preferred_element_type=jnp.float32) + b1
    mean = h.mean(-1, keepdims=True)
    var = ((h - mean) ** 2).mean(-1, keepdims=True)
    hn = (h - mean) * lax.rsqrt(var + LN_EPS) * gamma + beta
    hn = jnp.where(hn >= 0.0, hn, LEAKY_SLOPE * hn)
    return hn @ w2_row.T + b2


if __name__ == "__main__":
    # Small config consistent with the module: down_dim = C*H*W = 256, hidden = 128.
    B, C, H, W = 2, 32, 2, 4
    down_dim = C * H * W

    key = jax.random.PRNGKey(0)
    k_x, k_p = jax.random.split(key)
    x = jax.random.normal(k_x, (B, C, H, W), jnp.float32)
    params = make_params(down_dim, k_p)

    out = jax.block_until_ready(discriminator_forward(x, params))
    ref = jax.block_until_ready(_reference(x, params))

    assert out.shape == (B, 1)
    np.testing.assert_allclose(np.asarray(out), np.asarray(ref), rtol=1e-3, atol=1e-4)

    print("KERNEL_OK")
</pallas_src>

<mosaic_0001>
module attributes {stable_mosaic.version = 11 : i64} {
  func.func @_disc_fc_kernel(%arg0: i32, %arg1: memref<128x256xbf16, #tpu.memory_space<vmem>>, %arg2: memref<256x128xbf16, #tpu.memory_space<vmem>>, %arg3: memref<3x128xf32, #tpu.memory_space<vmem>>, %arg4: memref<1x128xf32, #tpu.memory_space<vmem>>, %arg5: memref<1x1xf32, #tpu.memory_space<smem>>, %arg6: memref<1x1x128xf32, #tpu.memory_space<vmem>>) attributes {dimension_semantics = [#tpu.dimension_semantics<parallel>], iteration_bounds = array<i64: 1>, scalar_prefetch = 0 : i64, scratch_operands = 0 : i64, tpu.core_type = #tpu.core_type<tc>, window_params = [{transform_indices = @transform_0, window_bounds = array<i64: 128, 256>}, {pipeline_mode = #tpu.pipeline_mode<synchronous>, transform_indices = @transform_1, window_bounds = array<i64: 256, 128>}, {pipeline_mode = #tpu.pipeline_mode<synchronous>, transform_indices = @transform_2, window_bounds = array<i64: 3, 128>}, {pipeline_mode = #tpu.pipeline_mode<synchronous>, transform_indices = @transform_3, window_bounds = array<i64: 1, 128>}, {transform_indices = @transform_4, window_bounds = array<i64: 1, 1>}, {transform_indices = @transform_5, window_bounds = array<i64: 1, 1, 128>}]} {
    %c0 = arith.constant 0 : index
    %c0_0 = arith.constant 0 : index
    %0 = vector.load %arg1[%c0, %c0_0] : memref<128x256xbf16, #tpu.memory_space<vmem>>, vector<128x256xbf16>
    %c0_1 = arith.constant 0 : index
    %c0_2 = arith.constant 0 : index
    %1 = vector.load %arg2[%c0_1, %c0_2] : memref<256x128xbf16, #tpu.memory_space<vmem>>, vector<256x128xbf16>
    %cst = arith.constant dense<0.000000e+00> : vector<128x128xf32>
    %2 = tpu.matmul %0, %1, %cst {dimension_numbers = #tpu.dot_dimension_numbers<[1], [0], [0], [1], [0, 0, 1, 1], [], []>} : vector<128x256xbf16>, vector<256x128xbf16>, vector<128x128xf32> -> vector<128x128xf32>
    %c0_3 = arith.constant 0 : index
    %c0_4 = arith.constant 0 : index
    %3 = vector.load %arg3[%c0_3, %c0_4] : memref<3x128xf32, #tpu.memory_space<vmem>>, vector<1x128xf32>
    %4 = vector.broadcast %3 : vector<1x128xf32> to vector<128x128xf32>
    %5 = arith.addf %2, %4 : vector<128x128xf32>
    %cst_5 = arith.constant dense<0.000000e+00> : vector<128xf32>
    %6 = vector.multi_reduction <add>, %5, %cst_5 [1] : vector<128x128xf32> to vector<128xf32>
    %7 = vector.shape_cast %6 : vector<128xf32> to vector<128x1xf32>
    %cst_6 = arith.constant 1.280000e+02 : f32
    %8 = vector.broadcast %cst_6 : f32 to vector<128x1xf32>
    %9 = arith.divf %7, %8 : vector<128x1xf32>
    %10 = vector.broadcast %9 : vector<128x1xf32> to vector<128x128xf32>
    %11 = arith.subf %5, %10 : vector<128x128xf32>
    %12 = arith.mulf %11, %11 : vector<128x128xf32>
    %cst_7 = arith.constant dense<0.000000e+00> : vector<128xf32>
    %13 = vector.multi_reduction <add>, %12, %cst_7 [1] : vector<128x128xf32> to vector<128xf32>
    %14 = vector.shape_cast %13 : vector<128xf32> to vector<128x1xf32>
    %cst_8 = arith.constant 1.280000e+02 : f32
    %15 = vector.broadcast %cst_8 : f32 to vector<128x1xf32>
    %16 = arith.divf %14, %15 : vector<128x1xf32>
    %cst_9 = arith.constant 8.000000e-01 : f32
    %17 = vector.broadcast %cst_9 : f32 to vector<128x1xf32>
    %18 = arith.addf %16, %17 : vector<128x1xf32>
    %19 = math.rsqrt %18 : vector<128x1xf32>
    %20 = vector.broadcast %19 : vector<128x1xf32> to vector<128x128xf32>
    %21 = arith.mulf %11, %20 : vector<128x128xf32>
    %c1 = arith.constant 1 : index
    %c0_10 = arith.constant 0 : index
    %22 = vector.load %arg3[%c1, %c0_10] : memref<3x128xf32, #tpu.memory_space<vmem>>, vector<1x128xf32>
    %23 = vector.broadcast %22 : vector<1x128xf32> to vector<128x128xf32>
    %24 = arith.mulf %21, %23 : vector<128x128xf32>
    %c2 = arith.constant 2 : index
    %c0_11 = arith.constant 0 : index
    %25 = vector.load %arg3[%c2, %c0_11] : memref<3x128xf32, #tpu.memory_space<vmem>>, vector<1x128xf32>
    %26 = vector.broadcast %25 : vector<1x128xf32> to vector<128x128xf32>
    %27 = arith.addf %24, %26 : vector<128x128xf32>
    %cst_12 = arith.constant 0.000000e+00 : f32
    %28 = vector.broadcast %cst_12 : f32 to vector<128x128xf32>
    %29 = arith.cmpf oge, %27, %28 : vector<128x128xf32>
    %cst_13 = arith.constant 2.000000e-01 : f32
    %30 = vector.broadcast %cst_13 : f32 to vector<128x128xf32>
    %31 = arith.mulf %30, %27 : vector<128x128xf32>
    %32 = arith.select %29, %27, %31 : vector<128x128xi1>, vector<128x128xf32>
    %c0_14 = arith.constant 0 : index
    %c0_15 = arith.constant 0 : index
    %33 = vector.load %arg4[%c0_14, %c0_15] : memref<1x128xf32, #tpu.memory_space<vmem>>, vector<1x128xf32>
    %34 = vector.broadcast %33 : vector<1x128xf32> to vector<128x128xf32>
    %35 = arith.mulf %32, %34 : vector<128x128xf32>
    %cst_16 = arith.constant dense<0.000000e+00> : vector<128xf32>
    %36 = vector.multi_reduction <add>, %35, %cst_16 [1] : vector<128x128xf32> to vector<128xf32>
    %c0_17 = arith.constant 0 : index
    %c0_18 = arith.constant 0 : index
    %37 = memref.load %arg5[%c0_17, %c0_18] : memref<1x1xf32, #tpu.memory_space<smem>>
    %38 = vector.broadcast %37 : f32 to vector<128xf32>
    %39 = arith.addf %36, %38 : vector<128xf32>
    %c0_19 = arith.constant 0 : index
    %c0_20 = arith.constant 0 : index
    %c0_21 = arith.constant 0 : index
    %40 = vector.load %arg6[%c0_19, %c0_20, %c0_21] : memref<1x1x128xf32, #tpu.memory_space<vmem>>, vector<1x1x128xf32>
    %41 = vector.shape_cast %40 : vector<1x1x128xf32> to vector<128xf32>
    %42 = vector.shape_cast %39 : vector<128xf32> to vector<1x1x128xf32>
    tpu.vector_store %arg6[%c0_19, %c0_20, %c0_21], %42 {strides = array<i32>} : memref<1x1x128xf32, #tpu.memory_space<vmem>>, vector<1x1x128xf32>,
    return
  }
  func.func @transform_0(%arg0: i32) -> (i32, i32) {
    %c0_i32 = arith.constant 0 : i32
    %c0_i32_0 = arith.constant 0 : i32
    return %arg0, %c0_i32 : i32, i32
  }
  func.func @transform_1(%arg0: i32) -> (i32, i32) {
    %c0_i32 = arith.constant 0 : i32
    %c0_i32_0 = arith.constant 0 : i32
    %c0_i32_1 = arith.constant 0 : i32
    return %c0_i32, %c0_i32_0 : i32, i32
  }
  func.func @transform_2(%arg0: i32) -> (i32, i32) {
    %c0_i32 = arith.constant 0 : i32
    %c0_i32_0 = arith.constant 0 : i32
    %c0_i32_1 = arith.constant 0 : i32
    return %c0_i32, %c0_i32_0 : i32, i32
  }
  func.func @transform_3(%arg0: i32) -> (i32, i32) {
    %c0_i32 = arith.constant 0 : i32
    %c0_i32_0 = arith.constant 0 : i32
    %c0_i32_1 = arith.constant 0 : i32
    return %c0_i32, %c0_i32_0 : i32, i32
  }
  func.func @transform_4(%arg0: i32) -> (i32, i32) {
    %c0_i32 = arith.constant 0 : i32
    %c0_i32_0 = arith.constant 0 : i32
    %c0_i32_1 = arith.constant 0 : i32
    return %c0_i32, %c0_i32_0 : i32, i32
  }
  func.func @transform_5(%arg0: i32) -> (i32, i32, i32) {
    %c0_i32 = arith.constant 0 : i32
    %c0_i32_0 = arith.constant 0 : i32
    %c0_i32_1 = arith.constant 0 : i32
    return %arg0, %c0_i32, %c0_i32_0 : i32, i32, i32
  }
}

</mosaic_0001>

<bundles_post_ra>
// kernel: tpu_custom_call.1
= control target key start
LH: loop header
LB: loop body
LE: loop exit
PB: predicated region body
PF: predicated region fallthrough
CT: control target
= control target key end

     0   :  { %11 = vsyncpa [#allocation4], 0  ;;  %s1493_s0 = inlined_call_operand.hbm [shape: bf16[128,256], index: 0, kind: input, shape index: {}]   ;;  %s1494_s1 = inlined_call_operand.hbm [shape: bf16[256,128], index: 1, kind: input, shape index: {}]   ;;  %s1495_s2 = inlined_call_operand.vmem [shape: f32[3,128], index: 2, kind: input, shape index: {}]   ;;  %s1496_s3 = inlined_call_operand.vmem [shape: f32[1,128], index: 3, kind: input, shape index: {}]   ;;  %s1497_s4 = inlined_call_operand.<no memory space> [shape: f32[1,1], index: 4, kind: input, shape index: {}]   ;;  %s1498_s5 = inlined_call_operand.hbm [shape: f32[1,1,128], index: 5, kind: output, shape index: {}]  }
   0x1   :  { %12 = vsyncpa [#allocation7], 0 }
   0x2   :  { %13 = vsyncpa [#allocation5], 0  ;;  %s1129_s18 = smov [#allocation3]   ;;  %s1057_s22 = scalar_lea.hbm %s1493_s0, 2048 }
   0x3   :  { %s19_s19 = sshll.u32 %s1129_s18, 4  ;;  %p1058_p0 = scmp.ne.s32.totalorder %s1493_s0, %s1057_s22  ;;  %s20_s19 = int_to_ptr.vmem [resolvable:$true] %s19_s19 }
   0x4   :  { %p1061_p1 = scmp.lt.u32.totalorder %s1057_s22, %s1493_s0 }
   0x6   :  { %p1063_p2 = pnand %p1061_p1, %p1058_p0 }
   0x8   :  { %1066 = shalt.err (!%p1063_p2)
}
   0x9   :  { %s1067_s27 = scalar_lea.vmem %s20_s19, 2048  ;;  %p1072_p4 = scmp.lt.s32.totalorder %s20_s19, %s20_s19 }
   0xa   :  { %p1068_p3 = scmp.ne.s32.totalorder %s20_s19, %s1067_s27  ;;  %p1073_p5 = scmp.lt.s32.totalorder %s1067_s27, %s1067_s27 }
   0xc   :  { %p1074_p6 = por %p1073_p5, %p1072_p4 }
   0xe   :  { %p1075_p7 = pnand %p1074_p6, %p1068_p3 }
  0x10   :  { %1078 = shalt.err (!%p1075_p7)
}
  0x11   :  { %s1130_s28 = smov 128   ;;  %s1131_s29 = smov 8  }
  0x12   :  { %25 = dma.hbm_to_vmem [thread:$0]  %s1493_s0, 2048, %s20_s19, [#allocation4], %s1130_s28, %s1130_s28, %s1131_s29  }
  0x13   :  { %s1132_s7 = smov [#allocation6]   ;;  %s1079_s11 = scalar_lea.hbm %s1494_s1, 2048 }
  0x14   :  { %s31_s8 = sshll.u32 %s1132_s7, 4  ;;  %p1080_p8 = scmp.ne.s32.totalorder %s1494_s1, %s1079_s11  ;;  %s32_s8 = int_to_ptr.vmem [resolvable:$true] %s31_s8 }
  0x15   :  { %p1083_p9 = scmp.lt.u32.totalorder %s1079_s11, %s1494_s1 }
  0x17   :  { %p1085_p10 = pnand %p1083_p9, %p1080_p8 }
  0x19   :  { %1088 = shalt.err (!%p1085_p10)
}
  0x1a   :  { %s1089_s16 = scalar_lea.vmem %s32_s8, 2048  ;;  %p1094_p12 = scmp.lt.s32.totalorder %s32_s8, %s32_s8 }
  0x1b   :  { %p1090_p11 = scmp.ne.s32.totalorder %s32_s8, %s1089_s16  ;;  %p1095_p13 = scmp.lt.s32.totalorder %s1089_s16, %s1089_s16 }
  0x1d   :  { %p1096_p0 = por %p1095_p13, %p1094_p12 }
  0x1f   :  { %p1097_p1 = pnand %p1096_p0, %p1090_p11 }
  0x21   :  { %1100 = shalt.err (!%p1097_p1)
}
  0x22   :  { %s1133_s0 = smov 64   ;;  %s1134_s17 = smov 4  }
  0x23   :  { %37 = dma.hbm_to_vmem [thread:$0]  %s1494_s1, 2048, %s32_s8, [#allocation7], %s1133_s0, %s1133_s0, %s1134_s17  }
  0x24   :  { %1123 = dma.done.wait [#allocation4], 2048  }
  0x25   :  { %1124 = vsyncadd [#allocation4], 4294965248 }
  0x26   :  { %1125 = dma.done.wait [#allocation7], 2048  }
  0x27   :  { %1126 = vsyncadd [#allocation7], 4294965248  ;;  %v985_v0 = vld [vmem:[#allocation6 + $0x40] sm:$0xff]   ;;  %v987_v2 = vld [vmem:[#allocation6 + $0x48] sm:$0xff]  }
  0x28   :  { %v986_v1 = vld [vmem:[#allocation6] sm:$0xff]   ;;  %898 = vmatprep.subr.bf16.mxu0 %v985_v0  ;;  %962 = vmatprep.subr.bf16.mxu1 %v985_v0  ;;  %v988_v3 = vld [vmem:[#allocation6 + $0x8] sm:$0xff]   ;;  %v989_v4 = vld [vmem:[#allocation6 + $0x50] sm:$0xff]  }
  0x29   :  { %899 = vmatpush3.bf16.msra.mxu0 %v986_v1  ;;  %970 = vmatpush3.bf16.msra.mxu1 %v986_v1  ;;  %v990_v5 = vld [vmem:[#allocation6 + $0x10] sm:$0xff]   ;;  %v991_v6 = vld [vmem:[#allocation6 + $0x58] sm:$0xff]   ;;  %v993_v8 = vld [vmem:[#allocation6 + $0x60] sm:$0xff]  }
  0x2a   :  { %900 = vmatprep.subr.bf16.mxu0 %v987_v2  ;;  %963 = vmatprep.subr.bf16.mxu1 %v987_v2  ;;  %v992_v7 = vld [vmem:[#allocation6 + $0x18] sm:$0xff]   ;;  %v994_v9 = vld [vmem:[#allocation6 + $0x20] sm:$0xff]   ;;  %v995_v10 = vld [vmem:[#allocation6 + $0x68] sm:$0xff]  }
  0x2b   :  { %v1003_v11 = vld [vmem:[#allocation3 + $0x4] ss:$8 sps:$4 sm:$0xff]   ;;  %v997_v14 = vld [vmem:[#allocation6 + $0x70] sm:$0xff]   ;;  %v999_v16 = vld [vmem:[#allocation6 + $0x78] sm:$0xff]  }
  0x2c   :  { %v1006_v12 = vld [vmem:[#allocation3 + $0x44] ss:$8 sps:$4 sm:$0xff]   ;;  %312 = vmatprep.mubr.bf16.mxu0 %v1003_v11  ;;  %v998_v15 = vld [vmem:[#allocation6 + $0x30] sm:$0xff]   ;;  %v1000_v17 = vld [vmem:[#allocation6 + $0x38] sm:$0xff]  }
  0x2d   :  { %901 = vmatpush3.bf16.msra.mxu0 %v988_v3  ;;  %971 = vmatpush3.bf16.msra.mxu1 %v988_v3  ;;  %v996_v13 = vld [vmem:[#allocation6 + $0x28] sm:$0xff]   ;;  %v1007_v20 = vld [vmem:[#allocation3 + $0x14] ss:$8 sps:$4 sm:$0xff]   ;;  %v1009_v22 = vld [vmem:[#allocation3 + $0x10] ss:$8 sps:$4 sm:$0xff]  }
  0x2e   :  { %902 = vmatprep.subr.bf16.mxu0 %v989_v4  ;;  %964 = vmatprep.subr.bf16.mxu1 %v989_v4  ;;  %v1001_v18 = vld [vmem:[#allocation3] ss:$8 sps:$4 sm:$0xff]   ;;  %v1010_v21 = vld [vmem:[#allocation3 + $0x54] ss:$8 sps:$4 sm:$0xff]   ;;  %v1012_v23 = vld [vmem:[#allocation3 + $0x50] ss:$8 sps:$4 sm:$0xff]  }
  0x2f   :  { %344 = vmatprep.mubr.bf16.mxu1 %v1006_v12  ;;  %v1004_v19 = vld [vmem:[#allocation3 + $0x40] ss:$8 sps:$4 sm:$0xff]   ;;  %v1013_v24 = vld [vmem:[#allocation3 + $0x24] ss:$8 sps:$4 sm:$0xff]   ;;  %v1018_v28 = vld [vmem:[#allocation3 + $0x34] ss:$8 sps:$4 sm:$0xff]  }
  0x30   :  { %v1016_v25 = vld [vmem:[#allocation3 + $0x64] ss:$8 sps:$4 sm:$0xff]   ;;  %v1015_v26 = vld [vmem:[#allocation3 + $0x20] ss:$8 sps:$4 sm:$0xff]   ;;  %v1022_v29 = vld [vmem:[#allocation3 + $0x74] ss:$8 sps:$4 sm:$0xff]  }
  0x31   :  { %903 = vmatpush3.bf16.msra.mxu0 %v990_v5  ;;  %972 = vmatpush3.bf16.msra.mxu1 %v990_v5  ;;  %v1020_v27 = vld [vmem:[#allocation3 + $0x60] ss:$8 sps:$4 sm:$0xff]   ;;  %v1021_v30 = vld [vmem:[#allocation3 + $0x30] ss:$8 sps:$4 sm:$0xff]  }
  0x32   :  { %904 = vmatprep.subr.bf16.mxu0 %v991_v6  ;;  %965 = vmatprep.subr.bf16.mxu1 %v991_v6  ;;  %v1024_v31 = vld [vmem:[#allocation3 + $0x70] ss:$8 sps:$4 sm:$0xff]   ;;  %v1193_v36 = vld [vmem:[%s1495_s2] ss:$0 sm:$0xff] }
  0x35   :  { %905 = vmatpush3.bf16.msra.mxu0 %v992_v7  ;;  %973 = vmatpush3.bf16.msra.mxu1 %v992_v7 }
  0x36   :  { %906 = vmatprep.subr.bf16.mxu0 %v993_v8  ;;  %966 = vmatprep.subr.bf16.mxu1 %v993_v8 }
  0x39   :  { %907 = vmatpush3.bf16.msra.mxu0 %v994_v9  ;;  %974 = vmatpush3.bf16.msra.mxu1 %v994_v9 }
  0x3a   :  { %908 = vmatprep.subr.bf16.mxu0 %v995_v10  ;;  %967 = vmatprep.subr.bf16.mxu1 %v995_v10 }
  0x3d   :  { %909 = vmatpush3.bf16.msra.mxu0 %v996_v13  ;;  %975 = vmatpush3.bf16.msra.mxu1 %v996_v13 }
  0x3e   :  { %910 = vmatprep.subr.bf16.mxu0 %v997_v14  ;;  %968 = vmatprep.subr.bf16.mxu1 %v997_v14 }
  0x41   :  { %911 = vmatpush3.bf16.msra.mxu0 %v998_v15  ;;  %976 = vmatpush3.bf16.msra.mxu1 %v998_v15 }
  0x42   :  { %912 = vmatprep.subr.bf16.mxu0 %v999_v16  ;;  %969 = vmatprep.subr.bf16.mxu1 %v999_v16 }
  0x45   :  { %913 = vmatpush3.bf16.msra.mxu0 %v1000_v17  ;;  %977 = vmatpush3.bf16.msra.mxu1 %v1000_v17 }
  0x48   :  { %313 = vmatmul.mubr.bf16.vlgmr.msra.gmra.mrb[0].mxu0 %v1001_v18  ;;  %345 = vmatmul.mubr.bf16.vlgmr.msra.gmra.mrb[0].mxu1 %v1004_v19 }
  0x49   :  { %320 = vmatprep.mubr.bf16.mxu0 %v1007_v20  ;;  %352 = vmatprep.mubr.bf16.mxu1 %v1010_v21 }
  0x50   :  { %321 = vmatmul.mubr.bf16.gmra.mrb[4].mxu0 %v1009_v22  ;;  %353 = vmatmul.mubr.bf16.gmra.mrb[4].mxu1 %v1012_v23 }
  0x51   :  { %328 = vmatprep.mubr.bf16.mxu0 %v1013_v24  ;;  %360 = vmatprep.mubr.bf16.mxu1 %v1016_v25 }
  0x58   :  { %329 = vmatmul.mubr.bf16.gmra.mrb[8].mxu0 %v1015_v26  ;;  %361 = vmatmul.mubr.bf16.gmra.mrb[8].mxu1 %v1020_v27 }
  0x59   :  { %336 = vmatprep.mubr.bf16.mxu0 %v1018_v28  ;;  %368 = vmatprep.mubr.bf16.mxu1 %v1022_v29 }
  0x60   :  { %337 = vmatmul.mubr.bf16.gmra.mrb[12].mxu0 %v1021_v30  ;;  %369 = vmatmul.mubr.bf16.gmra.mrb[12].mxu1 %v1024_v31 }
 0x11b   :  { %v914_v32 = vpop.f32.mrb[0].mxu0  ;;  %v938_v33 = vpop.f32.mrb[0].mxu1 }
 0x11c   :  { %v915_v34 = vpop.f32.mrb[1].mxu0  ;;  %v939_v35 = vpop.f32.mrb[1].mxu1 }
 0x11d   :  { %v916_v37 = vadd.f32 %v915_v34, %v914_v32  ;;  %v940_v38 = vadd.f32 %v939_v35, %v938_v33  ;;  %v917_v39 = vpop.f32.mrb[2].mxu0  ;;  %v941_v40 = vpop.f32.mrb[2].mxu1 }
 0x11e   :  { %v918_v41 = vpop.f32.mrb[3].mxu0  ;;  %v942_v42 = vpop.f32.mrb[3].mxu1 }
 0x11f   :  { %v919_v43 = vadd.f32 %v918_v41, %v917_v39  ;;  %v943_v44 = vadd.f32 %v942_v42, %v941_v40  ;;  %v1196_v45 = vadd.f32 %v916_v37, %v1193_v36  ;;  %v1203_v47 = vadd.f32 %v940_v38, %v1193_v36 }
 0x121   :  { %377 = vadd.xlane.f32.xlu0 %v1196_v45  ;;  %v1200_v46 = vadd.f32 %v943_v44, %v1193_v36  ;;  %v1211_v60 = vadd.f32 %v919_v43, %v1193_v36 }
 0x123   :  { %395 = vadd.xlane.f32.xlu1 %v1200_v46  ;;  %v920_v48 = vpop.f32.mrb[4].mxu0  ;;  %v944_v49 = vpop.f32.mrb[4].mxu1 }
 0x124   :  { %v921_v50 = vpop.f32.mrb[5].mxu0  ;;  %v945_v51 = vpop.f32.mrb[5].mxu1 }
 0x125   :  { %v922_v52 = vadd.f32 %v921_v50, %v920_v48  ;;  %v923_v53 = vpop.f32.mrb[6].mxu0  ;;  %393 = vadd.xlane.f32.xlu0 %v1203_v47  ;;  %v946_v54 = vadd.f32 %v945_v51, %v944_v49  ;;  %v947_v55 = vpop.f32.mrb[6].mxu1 }
 0x126   :  { %v924_v56 = vpop.f32.mrb[7].mxu0  ;;  %v948_v57 = vpop.f32.mrb[7].mxu1 }
 0x127   :  { %v925_v58 = vadd.f32 %v924_v56, %v923_v53  ;;  %v1208_v59 = vadd.f32 %v922_v52, %v1193_v36  ;;  %v949_v61 = vadd.f32 %v948_v57, %v947_v55  ;;  %v1216_v62 = vadd.f32 %v946_v54, %v1193_v36 }
 0x129   :  { %381 = vadd.xlane.f32.xlu1 %v1208_v59  ;;  %379 = vadd.xlane.f32.xlu0 %v1211_v60  ;;  %v1219_v0 = vadd.f32 %v925_v58, %v1193_v36  ;;  %v1224_v6 = vadd.f32 %v949_v61, %v1193_v36 }
 0x12b   :  { %v926_v63 = vpop.f32.mrb[8].mxu0  ;;  %v950_v1 = vpop.f32.mrb[8].mxu1 }
 0x12c   :  { %v927_v2 = vpop.f32.mrb[9].mxu0  ;;  %v951_v3 = vpop.f32.mrb[9].mxu1 }
 0x12d   :  { %v928_v4 = vadd.f32 %v927_v2, %v926_v63  ;;  %v929_v5 = vpop.f32.mrb[10].mxu0  ;;  %383 = vadd.xlane.f32.xlu1 %v1219_v0  ;;  %397 = vadd.xlane.f32.xlu0 %v1216_v62  ;;  %v952_v7 = vadd.f32 %v951_v3, %v950_v1  ;;  %v953_v8 = vpop.f32.mrb[10].mxu1 }
 0x12e   :  { %v930_v9 = vpop.f32.mrb[11].mxu0  ;;  %v954_v10 = vpop.f32.mrb[11].mxu1 }
 0x12f   :  { %v931_v11 = vadd.f32 %v930_v9, %v929_v5  ;;  %v1227_v12 = vadd.f32 %v928_v4, %v1193_v36  ;;  %v955_v13 = vadd.f32 %v954_v10, %v953_v8  ;;  %v1244_v29 = vadd.f32 %v952_v7, %v1193_v36 }
 0x131   :  { %399 = vadd.xlane.f32.xlu1 %v1224_v6  ;;  %385 = vadd.xlane.f32.xlu0 %v1227_v12  ;;  %v1232_v15 = vadd.f32 %v931_v11, %v1193_v36  ;;  %v1248_v30 = vadd.f32 %v955_v13, %v1193_v36 }
 0x133   :  { %v932_v14 = vpop.f32.mrb[12].mxu0  ;;  %v956_v16 = vpop.f32.mrb[12].mxu1 }
 0x134   :  { %v933_v17 = vpop.f32.mrb[13].mxu0  ;;  %v957_v18 = vpop.f32.mrb[13].mxu1 }
 0x135   :  { %v934_v19 = vadd.f32 %v933_v17, %v932_v14  ;;  %v935_v20 = vpop.f32.mrb[14].mxu0  ;;  %387 = vadd.xlane.f32.xlu1 %v1232_v15  ;;  %v958_v21 = vadd.f32 %v957_v18, %v956_v16  ;;  %v959_v22 = vpop.f32.mrb[14].mxu1 }
 0x136   :  { %v936_v23 = vpop.f32.mrb[15].mxu0  ;;  %v960_v24 = vpop.f32.mrb[15].mxu1 }
 0x137   :  { %v937_v25 = vadd.f32 %v936_v23, %v935_v20  ;;  %v1236_v26 = vadd.f32 %v934_v19, %v1193_v36  ;;  %v961_v27 = vadd.f32 %v960_v24, %v959_v22  ;;  %v1251_v31 = vadd.f32 %v958_v21, %v1193_v36 }
 0x139   :  { %389 = vadd.xlane.f32.xlu0 %v1236_v26  ;;  %v1240_v28 = vadd.f32 %v937_v25, %v1193_v36  ;;  %v1255_v32 = vadd.f32 %v961_v27, %v1193_v36 }
 0x13b   :  { %391 = vadd.xlane.f32.xlu1 %v1240_v28 }
 0x13d   :  { %401 = vadd.xlane.f32.xlu0 %v1244_v29 }
 0x13f   :  { %403 = vadd.xlane.f32.xlu1 %v1248_v30 }
 0x141   :  { %405 = vadd.xlane.f32.xlu0 %v1251_v31 }
 0x143   :  { %407 = vadd.xlane.f32.xlu1 %v1255_v32 }
 0x1ae   :  { %v378_v33 = vpop.xlane.xlu0 %377 }
 0x1af   :  { %v410_v34 = vmul.f32 0.0078125, %v378_v33 }
 0x1b0   :  { %v396_v37 = vpop.xlane.xlu1 %395 }
 0x1b1   :  { %v1260_v35 = vsub.f32 %v1196_v45, %v410_v34  ;;  %v419_v36 = vmul.f32 0.0078125, %v396_v37 }
 0x1b2   :  { %v394_v38 = vpop.xlane.xlu0 %393 }
 0x1b3   :  { %v418_v39 = vmul.f32 0.0078125, %v394_v38  ;;  %v442_v40 = vmul.f32 %v1260_v35, %v1260_v35  ;;  %v1276_v51 = vsub.f32 %v1200_v46, %v419_v36 }
 0x1b5   :  { %v1265_v41 = vsub.f32 %v1203_v47, %v418_v39  ;;  %458 = vadd.xlane.f32.xlu0 %v442_v40  ;;  %v451_v46 = vmul.f32 %v1276_v51, %v1276_v51 }
 0x1b6   :  { %v382_v42 = vpop.xlane.xlu1 %381  ;;  %v380_v43 = vpop.xlane.xlu0 %379 }
 0x1b7   :  { %v412_v44 = vmul.f32 0.0078125, %v382_v42  ;;  %v411_v48 = vmul.f32 0.0078125, %v380_v43  ;;  %v450_v49 = vmul.f32 %v1265_v41, %v1265_v41 }
 0x1b9   :  { %v1270_v45 = vsub.f32 %v1208_v59, %v412_v44  ;;  %v1273_v50 = vsub.f32 %v1211_v60, %v411_v48  ;;  %474 = vadd.xlane.f32.xlu0 %v450_v49 }
 0x1ba   :  { %v384_v47 = vpop.xlane.xlu1 %383  ;;  %v398_v52 = vpop.xlane.xlu0 %397 }
 0x1bb   :  { %v413_v53 = vmul.f32 0.0078125, %v384_v47  ;;  %v420_v54 = vmul.f32 0.0078125, %v398_v52  ;;  %v444_v55 = vmul.f32 %v1270_v45, %v1270_v45  ;;  %v443_v56 = vmul.f32 %v1273_v50, %v1273_v50 }
 0x1bd   :  { %v1283_v57 = vsub.f32 %v1216_v62, %v420_v54  ;;  %462 = vadd.xlane.f32.xlu0 %v444_v55  ;;  %460 = vadd.xlane.f32.xlu1 %v443_v56  ;;  %v1288_v60 = vsub.f32 %v1219_v0, %v413_v53 }
 0x1be   :  { %v400_v58 = vpop.xlane.xlu1 %399  ;;  %v386_v59 = vpop.xlane.xlu0 %385 }
 0x1bf   :  { %v421_v61 = vmul.f32 0.0078125, %v400_v58  ;;  %v414_v63 = vmul.f32 0.0078125, %v386_v59  ;;  %v452_v1 = vmul.f32 %v1283_v57, %v1283_v57  ;;  %v445_v5 = vmul.f32 %v1288_v60, %v1288_v60  ;;  %v1342_v59 = vld [vmem:[%s1495_s2 + $0x1] ss:$0 sm:$0xff] }
 0x1c1   :  { %v1293_v2 = vsub.f32 %v1227_v12, %v414_v63  ;;  %476 = vadd.xlane.f32.xlu1 %v451_v46  ;;  %478 = vadd.xlane.f32.xlu0 %v452_v1  ;;  %v1296_v3 = vsub.f32 %v1224_v6, %v421_v61 }
 0x1c2   :  { %v388_v62 = vpop.xlane.xlu1 %387 }
 0x1c3   :  { %v415_v4 = vmul.f32 0.0078125, %v388_v62  ;;  %v446_v0 = vmul.f32 %v1293_v2, %v1293_v2  ;;  %v453_v10 = vmul.f32 %v1296_v3, %v1296_v3 }
 0x1c5   :  { %464 = vadd.xlane.f32.xlu1 %v445_v5  ;;  %466 = vadd.xlane.f32.xlu0 %v446_v0  ;;  %v1303_v8 = vsub.f32 %v1232_v15, %v415_v4  ;;  %v1348_v4 = vld [vmem:[%s1495_s2 + $0x2] ss:$0 sm:$0xff] }
 0x1c6   :  { %v390_v7 = vpop.xlane.xlu0 %389 }
 0x1c7   :  { %v416_v9 = vmul.f32 0.0078125, %v390_v7  ;;  %v447_v17 = vmul.f32 %v1303_v8, %v1303_v8 }
 0x1c8   :  { %v392_v11 = vpop.xlane.xlu1 %391 }
 0x1c9   :  { %v1308_v6 = vsub.f32 %v1236_v26, %v416_v9  ;;  %v417_v12 = vmul.f32 0.0078125, %v392_v11  ;;  %480 = vadd.xlane.f32.xlu1 %v453_v10 }
 0x1ca   :  { %v402_v13 = vpop.xlane.xlu0 %401 }
 0x1cb   :  { %v1311_v14 = vsub.f32 %v1240_v28, %v417_v12  ;;  %v422_v16 = vmul.f32 0.0078125, %v402_v13  ;;  %v448_v15 = vmul.f32 %v1308_v6, %v1308_v6 }
 0x1cc   :  { %v404_v18 = vpop.xlane.xlu1 %403 }
 0x1cd   :  { %v1318_v19 = vsub.f32 %v1244_v29, %v422_v16  ;;  %v423_v20 = vmul.f32 0.0078125, %v404_v18  ;;  %468 = vadd.xlane.f32.xlu1 %v447_v17  ;;  %470 = vadd.xlane.f32.xlu0 %v448_v15  ;;  %v449_v24 = vmul.f32 %v1311_v14, %v1311_v14  ;;  %v1356_v16 = vld [vmem:[%s1496_s3] ss:$0 sm:$0xff] }
 0x1ce   :  { %v406_v21 = vpop.xlane.xlu0 %405 }
 0x1cf   :  { %v1321_v22 = vsub.f32 %v1248_v30, %v423_v20  ;;  %v424_v23 = vmul.f32 0.0078125, %v406_v21  ;;  %v454_v25 = vmul.f32 %v1318_v19, %v1318_v19 }
 0x1d0   :  { %v408_v26 = vpop.xlane.xlu1 %407 }
 0x1d1   :  { %v1328_v27 = vsub.f32 %v1251_v31, %v424_v23  ;;  %v425_v28 = vmul.f32 0.0078125, %v408_v26  ;;  %472 = vadd.xlane.f32.xlu1 %v449_v24  ;;  %482 = vadd.xlane.f32.xlu0 %v454_v25  ;;  %v455_v30 = vmul.f32 %v1321_v22, %v1321_v22 }
 0x1d3   :  { %v1331_v29 = vsub.f32 %v1255_v32, %v425_v28  ;;  %v456_v33 = vmul.f32 %v1328_v27, %v1328_v27 }
 0x1d5   :  { %484 = vadd.xlane.f32.xlu1 %v455_v30  ;;  %486 = vadd.xlane.f32.xlu0 %v456_v33  ;;  %v457_v34 = vmul.f32 %v1331_v29, %v1331_v29 }
 0x1d9   :  { %488 = vadd.xlane.f32.xlu1 %v457_v34 }
 0x242   :  { %v459_v31 = vpop.xlane.xlu0 %458 }
 0x243   :  { %v490_v37 = vmul.f32 0.0078125, %v459_v31 }
 0x245   :  { %v506_v38 = vadd.f32 0.8, %v490_v37 }
 0x246   :  { %v475_v39 = vpop.xlane.xlu0 %474 }
 0x247   :  { %1025 = vrsqrt.f32 %v506_v38  ;;  %v498_v40 = vmul.f32 0.0078125, %v475_v39 }
 0x249   :  { %v514_v32 = vadd.f32 0.8, %v498_v40 }
 0x24a   :  { %v461_v36 = vpop.xlane.xlu1 %460  ;;  %v463_v42 = vpop.xlane.xlu0 %462 }
 0x24b   :  { %1027 = vrsqrt.f32 %v514_v32  ;;  %v491_v43 = vmul.f32 0.0078125, %v461_v36  ;;  %v492_v44 = vmul.f32 0.0078125, %v463_v42 }
 0x24d   :  { %v507_v48 = vadd.f32 0.8, %v491_v43  ;;  %v508_v49 = vadd.f32 0.8, %v492_v44 }
 0x24e   :  { %v477_v47 = vpop.xlane.xlu1 %476  ;;  %v479_v52 = vpop.xlane.xlu0 %478 }
 0x24f   :  { %1029 = vrsqrt.f32 %v507_v48  ;;  %v499_v53 = vmul.f32 0.0078125, %v477_v47  ;;  %v500_v54 = vmul.f32 0.0078125, %v479_v52 }
 0x250   :  { %1031 = vrsqrt.f32 %v508_v49 }
 0x251   :  { %v1026_v55 = vpop.eup %1025  ;;  %v515_v56 = vadd.f32 0.8, %v499_v53  ;;  %v516_v58 = vadd.f32 0.8, %v500_v54 }
 0x252   :  { %v465_v46 = vpop.xlane.xlu1 %464  ;;  %v467_v61 = vpop.xlane.xlu0 %466  ;;  %v538_v63 = vmul.f32 %v1026_v55, %v1260_v35 }
 0x253   :  { %1033 = vrsqrt.f32 %v515_v56  ;;  %v493_v1 = vmul.f32 0.0078125, %v465_v46  ;;  %v494_v62 = vmul.f32 0.0078125, %v467_v61 }
 0x254   :  { %1035 = vrsqrt.f32 %v516_v58  ;;  %v559_v5 = vmul.f32 %v1342_v59, %v538_v63 }
 0x255   :  { %v1028_v0 = vpop.eup %1027  ;;  %v509_v7 = vadd.f32 0.8, %v493_v1  ;;  %v510_v9 = vadd.f32 0.8, %v494_v62 }
 0x256   :  { %v481_v10 = vpop.xlane.xlu1 %480  ;;  %v580_v11 = vadd.f32 %v1348_v4, %v559_v5  ;;  %v546_v12 = vmul.f32 %v1028_v0, %v1265_v41 }
 0x257   :  { %1037 = vrsqrt.f32 %v509_v7  ;;  %v501_v35 = vmul.f32 0.0078125, %v481_v10 }
 0x258   :  { %vm596_vm0 = vcmp.ge.f32.partialorder %v580_v11, 0.0  ;;  %v612_v13 = vmul.f32 0.2, %v580_v11  ;;  %v567_v17 = vmul.f32 %v1342_v59, %v546_v12  ;;  %1039 = vrsqrt.f32 %v510_v9 }
 0x259   :  { %v1030_v15 = vpop.eup %1029  ;;  %v517_v18 = vadd.f32 0.8, %v501_v35 }
 0x25a   :  { %v1032_v20 = vpop.eup %1031  ;;  %v469_v21 = vpop.xlane.xlu1 %468  ;;  %v628_v24 = vsel %vm596_vm0, %v580_v11, %v612_v13  ;;  %v588_v41 = vadd.f32 %v1348_v4, %v567_v17  ;;  %v539_v25 = vmul.f32 %v1030_v15, %v1273_v50  ;;  %vm744_vm0 = vcmask 130112  }
 0x25b   :  { %v471_v23 = vpop.xlane.xlu0 %470  ;;  %1041 = vrsqrt.f32 %v517_v18  ;;  %v495_v26 = vmul.f32 0.0078125, %v469_v21  ;;  %v651_v30 = vmul.f32 %v1356_v16, %v628_v24  ;;  %v540_v31 = vmul.f32 %v1032_v20, %v1270_v45 }
 0x25c   :  { %v496_v28 = vmul.f32 0.0078125, %v471_v23  ;;  %vm604_vm1 = vcmp.ge.f32.partialorder %v588_v41, 0.0  ;;  %v620_v33 = vmul.f32 0.2, %v588_v41  ;;  %v560_v34 = vmul.f32 %v1342_v59, %v539_v25 }
 0x25d   :  { %v1034_v37 = vpop.eup %1033  ;;  %v511_v38 = vadd.f32 0.8, %v495_v26  ;;  %667 = vadd.xlane.f32.xlu0 %v651_v30  ;;  %v561_v43 = vmul.f32 %v1342_v59, %v540_v31 }
 0x25e   :  { %v512_v39 = vadd.f32 0.8, %v496_v28  ;;  %v1036_v40 = vpop.eup %1035  ;;  %v473_v32 = vpop.xlane.xlu1 %472  ;;  %v636_v42 = vsel %vm604_vm1, %v588_v41, %v620_v33  ;;  %v581_v50 = vadd.f32 %v1348_v4, %v560_v34  ;;  %v547_v44 = vmul.f32 %v1034_v37, %v1276_v51 }
 0x25f   :  { %v483_v36 = vpop.xlane.xlu0 %482  ;;  %1043 = vrsqrt.f32 %v511_v38  ;;  %v497_v48 = vmul.f32 0.0078125, %v473_v32  ;;  %v659_v47 = vmul.f32 %v1356_v16, %v636_v42  ;;  %v582_v52 = vadd.f32 %v1348_v4, %v561_v43 }
 0x260   :  { %v502_v49 = vmul.f32 0.0078125, %v483_v36  ;;  %1045 = vrsqrt.f32 %v512_v39  ;;  %vm597_vm2 = vcmp.ge.f32.partialorder %v581_v50, 0.0  ;;  %v613_v45 = vmul.f32 0.2, %v581_v50 }
 0x261   :  { %v1038_v53 = vpop.eup %1037  ;;  %v513_v54 = vadd.f32 0.8, %v497_v48  ;;  %683 = vadd.xlane.f32.xlu0 %v659_v47  ;;  %v568_v56 = vmul.f32 %v1342_v59, %v547_v44  ;;  %v548_v58 = vmul.f32 %v1036_v40, %v1283_v57  ;;  %vm598_vm3 = vcmp.ge.f32.partialorder %v582_v52, 0.0 }
 0x262   :  { %v518_v55 = vadd.f32 0.8, %v502_v49  ;;  %v485_v46 = vpop.xlane.xlu1 %484  ;;  %v629_v61 = vsel %vm597_vm2, %v581_v50, %v613_v45  ;;  %v614_v63 = vmul.f32 0.2, %v582_v52  ;;  %v541_v1 = vmul.f32 %v1038_v53, %v1288_v60  ;;  %v1040_v62 = vpop.eup %1039 }
 0x263   :  { %v487_v51 = vpop.xlane.xlu0 %486  ;;  %1047 = vrsqrt.f32 %v513_v54  ;;  %v503_v5 = vmul.f32 0.0078125, %v485_v46  ;;  %v652_v7 = vmul.f32 %v1356_v16, %v629_v61  ;;  %v589_v10 = vadd.f32 %v1348_v4, %v568_v56 }
 0x264   :  { %v504_v0 = vmul.f32 0.0078125, %v487_v51  ;;  %1049 = vrsqrt.f32 %v518_v55  ;;  %v630_v9 = vsel %vm598_vm3, %v582_v52, %v614_v63  ;;  %v569_v11 = vmul.f32 %v1342_v59, %v548_v58 }
 0x265   :  { %v1042_v57 = vpop.eup %1041  ;;  %v519_v12 = vadd.f32 0.8, %v503_v5  ;;  %669 = vadd.xlane.f32.xlu1 %v652_v7  ;;  %v653_v13 = vmul.f32 %v1356_v16, %v630_v9  ;;  %v562_v60 = vmul.f32 %v1342_v59, %v541_v1  ;;  %vm605_vm4 = vcmp.ge.f32.partialorder %v589_v10, 0.0 }
 0x266   :  { %v520_v35 = vadd.f32 0.8, %v504_v0  ;;  %v489_v17 = vpop.xlane.xlu1 %488  ;;  %v621_v15 = vmul.f32 0.2, %v589_v10  ;;  %v590_v18 = vadd.f32 %v1348_v4, %v569_v11  ;;  %v542_v20 = vmul.f32 %v1040_v62, %v1293_v2 }
 0x267   :  { %1051 = vrsqrt.f32 %v519_v12  ;;  %671 = vadd.xlane.f32.xlu0 %v653_v13  ;;  %v505_v21 = vmul.f32 0.0078125, %v489_v17  ;;  %v583_v23 = vadd.f32 %v1348_v4, %v562_v60  ;;  %v549_v24 = vmul.f32 %v1042_v57, %v1296_v3 }
 0x268   :  { %1053 = vrsqrt.f32 %v520_v35  ;;  %v637_v41 = vsel %vm605_vm4, %v589_v10, %v621_v15  ;;  %vm606_vm5 = vcmp.ge.f32.partialorder %v590_v18, 0.0  ;;  %v622_v25 = vmul.f32 0.2, %v590_v18 }
 0x269   :  { %v1044_v26 = vpop.eup %1043  ;;  %v521_v28 = vadd.f32 0.8, %v505_v21  ;;  %v660_v30 = vmul.f32 %v1356_v16, %v637_v41  ;;  %vm599_vm6 = vcmp.ge.f32.partialorder %v583_v23, 0.0  ;;  %v615_v33 = vmul.f32 0.2, %v583_v23 }
 0x26a   :  { %v1046_v34 = vpop.eup %1045  ;;  %v638_v31 = vsel %vm606_vm5, %v590_v18, %v622_v25  ;;  %v563_v2 = vmul.f32 %v1342_v59, %v542_v20  ;;  %v570_v37 = vmul.f32 %v1342_v59, %v549_v24  ;;  %v543_v38 = vmul.f32 %v1044_v26, %v1303_v8 }
 0x26b   :  { %1055 = vrsqrt.f32 %v521_v28  ;;  %685 = vadd.xlane.f32.xlu1 %v660_v30  ;;  %v661_v3 = vmul.f32 %v1356_v16, %v638_v31  ;;  %v631_v39 = vsel %vm599_vm6, %v583_v23, %v615_v33  ;;  %v544_v40 = vmul.f32 %v1046_v34, %v1308_v6 }
 0x26c   :  { %v654_v32 = vmul.f32 %v1356_v16, %v631_v39  ;;  %v584_v36 = vadd.f32 %v1348_v4, %v563_v2  ;;  %v591_v42 = vadd.f32 %v1348_v4, %v570_v37  ;;  %v564_v50 = vmul.f32 %v1342_v59, %v543_v38 }
 0x26d   :  { %v1048_v43 = vpop.eup %1047  ;;  %687 = vadd.xlane.f32.xlu0 %v661_v3  ;;  %v565_v44 = vmul.f32 %v1342_v59, %v544_v40  ;;  %v733_v2 = vlaneseq  ;;  %v1426_v40 = vstv %s1497_s4  ;;  %vm751_vm1 = vcmask 195712   ;;  %s1135_s4 = smov [#allocation8]  }
 0x26e   :  { %v1050_v8 = vpop.eup %1049  ;;  %vm600_vm7 = vcmp.ge.f32.partialorder %v584_v36, 0.0  ;;  %v616_v48 = vmul.f32 0.2, %v584_v36  ;;  %vm607_vm8 = vcmp.ge.f32.partialorder %v591_v42, 0.0  ;;  %v623_v49 = vmul.f32 0.2, %v591_v42 }
 0x26f   :  { %673 = vadd.xlane.f32.xlu1 %v654_v32  ;;  %v585_v6 = vadd.f32 %v1348_v4, %v564_v50  ;;  %v586_v47 = vadd.f32 %v1348_v4, %v565_v44  ;;  %v545_v45 = vmul.f32 %v1048_v43, %v1311_v14  ;;  %v550_v52 = vmul.f32 %v1050_v8, %v1318_v19  ;;  %s852_s27 = sshll.u32 %s1135_s4, 4  ;;  %s853_s27 = int_to_ptr.vmem [resolvable:$true] %s852_s27 }
 0x270   :  { %v632_v53 = vsel %vm600_vm7, %v584_v36, %v616_v48  ;;  %v639_v54 = vsel %vm607_vm8, %v591_v42, %v623_v49  ;;  %v1418_v38 = vand.u32 127, %v733_v2  ;;  %vm758_vm2 = vcmask 261312   ;;  %s1101_s28 = scalar_lea.vmem %s853_s27, 16  ;;  %s1105_s29 = scalar_lea.vmem %s853_s27, 32 }
 0x271   :  { %v1052_v55 = vpop.eup %1051  ;;  %v655_v56 = vmul.f32 %v1356_v16, %v632_v53  ;;  %v662_v58 = vmul.f32 %v1356_v16, %v639_v54  ;;  %vm601_vm9 = vcmp.ge.f32.partialorder %v585_v6, 0.0  ;;  %v617_v46 = vmul.f32 0.2, %v585_v6  ;;  %p1102_p2 = scmp.ne.s32.totalorder %s853_s27, %s1101_s28  ;;  %p1106_p3 = scmp.lt.s32.totalorder %s853_s27, %s853_s27 }
 0x272   :  { %v1054_v51 = vpop.eup %1053  ;;  %vm602_vm10 = vcmp.ge.f32.partialorder %v586_v47, 0.0  ;;  %v618_v61 = vmul.f32 0.2, %v586_v47  ;;  %v566_v63 = vmul.f32 %v1342_v59, %v545_v45  ;;  %v571_v1 = vmul.f32 %v1342_v59, %v550_v52  ;;  %p1107_p4 = scmp.lt.s32.totalorder %s1105_s29, %s1101_s28 }
 0x273   :  { %675 = vadd.xlane.f32.xlu0 %v655_v56  ;;  %689 = vadd.xlane.f32.xlu1 %v662_v58  ;;  %v633_v14 = vsel %vm601_vm9, %v585_v6, %v617_v46  ;;  %v551_v19 = vmul.f32 %v1052_v55, %v1321_v22  ;;  %v552_v62 = vmul.f32 %v1054_v51, %v1328_v27  ;;  %v739_v39 = vadd.s32 4294967288, %v1418_v38 }
 0x274   :  { %v656_v5 = vmul.f32 %v1356_v16, %v633_v14  ;;  %v634_v0 = vsel %vm602_vm10, %v586_v47, %v618_v61  ;;  %v587_v7 = vadd.f32 %v1348_v4, %v566_v63  ;;  %v592_v9 = vadd.f32 %v1348_v4, %v571_v1  ;;  %p1108_p5 = por %p1107_p4, %p1106_p3 }
 0x275   :  { %v1056_v10 = vpop.eup %1055  ;;  %v657_v11 = vmul.f32 %v1356_v16, %v634_v0  ;;  %v572_v57 = vmul.f32 %v1342_v59, %v551_v19  ;;  %v573_v12 = vmul.f32 %v1342_v59, %v552_v62  ;;  %v746_v32 = vadd.s32 4294967280, %v1418_v38 }
 0x276   :  { %vm603_vm11 = vcmp.ge.f32.partialorder %v587_v7, 0.0  ;;  %v619_v35 = vmul.f32 0.2, %v587_v7  ;;  %vm608_vm12 = vcmp.ge.f32.partialorder %v592_v9, 0.0  ;;  %v624_v22 = vmul.f32 0.2, %v592_v9  ;;  %p1109_p6 = pnand %p1108_p5, %p1102_p2 }
 0x277   :  { %677 = vadd.xlane.f32.xlu1 %v656_v5  ;;  %679 = vadd.xlane.f32.xlu0 %v657_v11  ;;  %v593_v27 = vadd.f32 %v1348_v4, %v572_v57  ;;  %v594_v13 = vadd.f32 %v1348_v4, %v573_v12  ;;  %v553_v60 = vmul.f32 %v1056_v10, %v1331_v29  ;;  %v753_v50 = vadd.s32 4294967272, %v1418_v38 }
 0x278   :  { %v635_v17 = vsel %vm603_vm11, %v587_v7, %v619_v35  ;;  %v640_v15 = vsel %vm608_vm12, %v592_v9, %v624_v22  ;;  %v760_v47 = vadd.s32 4294967264, %v1418_v38  ;;  %v788_v55 = vadd.s32 4294967232, %v1418_v38 }
 0x279   :  { %v658_v18 = vmul.f32 %v1356_v16, %v635_v17  ;;  %v663_v20 = vmul.f32 %v1356_v16, %v640_v15  ;;  %vm609_vm13 = vcmp.ge.f32.partialorder %v593_v27, 0.0  ;;  %v625_v21 = vmul.f32 0.2, %v593_v27 }
 0x27a   :  { %vm610_vm14 = vcmp.ge.f32.partialorder %v594_v13, 0.0  ;;  %v626_v23 = vmul.f32 0.2, %v594_v13  ;;  %v574_v24 = vmul.f32 %v1342_v59, %v553_v60  ;;  %v767_v56 = vadd.s32 4294967256, %v1418_v38 }
 0x27b   :  { %681 = vadd.xlane.f32.xlu1 %v658_v18  ;;  %691 = vadd.xlane.f32.xlu0 %v663_v20  ;;  %v641_v41 = vsel %vm609_vm13, %v593_v27, %v625_v21  ;;  %v795_v46 = vadd.s32 4294967224, %v1418_v38  ;;  %v774_v1 = vadd.s32 4294967248, %v1418_v38  ;;  %v802_v5 = vadd.s32 4294967216, %v1418_v38 }
 0x27c   :  { %v664_v25 = vmul.f32 %v1356_v16, %v641_v41  ;;  %v642_v26 = vsel %vm610_vm14, %v594_v13, %v626_v23  ;;  %v595_v29 = vadd.f32 %v1348_v4, %v574_v24  ;;  %v1421_v4 = vshrl.u32 %v733_v2, 7 }
 0x27d   :  { %v665_v28 = vmul.f32 %v1356_v16, %v642_v26  ;;  %v809_v0 = vadd.s32 4294967208, %v1418_v38  ;;  %v781_v10 = vadd.s32 4294967240, %v1418_v38  ;;  %vm765_vm3 = vcmask 326912  }
 0x27e   :  { %vm611_vm15 = vcmp.ge.f32.partialorder %v595_v29, 0.0  ;;  %v627_v30 = vmul.f32 0.2, %v595_v29  ;;  %v742_v36 = vsub.s32 %v739_v39, %v1421_v4  ;;  %v737_v44 = vsub.s32 %v1418_v38, %v1421_v4 }
 0x27f   :  { %693 = vadd.xlane.f32.xlu1 %v664_v25  ;;  %695 = vadd.xlane.f32.xlu0 %v665_v28  ;;  %v749_v48 = vsub.s32 %v746_v32, %v1421_v4  ;;  %v756_v52 = vsub.s32 %v753_v50, %v1421_v4  ;;  %v763_v51 = vsub.s32 %v760_v47, %v1421_v4  ;;  %vm772_vm4 = vcmask 392512  }
 0x280   :  { %v643_v33 = vsel %vm611_vm15, %v595_v29, %v627_v30  ;;  %v791_v7 = vsub.s32 %v788_v55, %v1421_v4  ;;  %v770_v9 = vsub.s32 %v767_v56, %v1421_v4  ;;  %v798_v57 = vsub.s32 %v795_v46, %v1421_v4 }
 0x281   :  { %v666_v34 = vmul.f32 %v1356_v16, %v643_v33  ;;  %v777_v22 = vsub.s32 %v774_v1, %v1421_v4  ;;  %v805_v15 = vsub.s32 %v802_v5, %v1421_v4  ;;  %v812_v18 = vsub.s32 %v809_v0, %v1421_v4 }
 0x282   :  { %v816_v20 = vadd.s32 4294967200, %v1418_v38  ;;  %vm779_vm5 = vcmask 458112   ;;  %v784_v23 = vsub.s32 %v781_v10, %v1421_v4  ;;  %vm786_vm6 = vcmask 523712  }
 0x283   :  { %697 = vadd.xlane.f32.xlu1 %v666_v34  ;;  %vm793_vm7 = vcmask 589312   ;;  %v823_v34 = vadd.s32 4294967192, %v1418_v38  ;;  %vm800_vm8 = vcmask 654912   ;;  %vm807_vm9 = vcmask 720512  }
 0x284   :  { %v819_v2 = vsub.s32 %v816_v20, %v1421_v4  ;;  %v837_v39 = vadd.s32 4294967176, %v1418_v38  ;;  %vm814_vm10 = vcmask 786112   ;;  %vm821_vm11 = vcmask 851712  }
 0x285   :  { %vm828_vm12 = vcmask 917312   ;;  %vm835_vm13 = vcmask 982912   ;;  %vm842_vm14 = vcmask 1048512  }
 0x2ea   :  { %v668_v31 = vpop.xlane.xlu0 %667 }
 0x2eb   :  { %v701_v8 = vadd.f32 %v1426_v40, %v668_v31 }
 0x2ed   :  { %v738_v54 = vrot.slane %v701_v8, %v737_v44  ;;  %v826_v8 = vsub.s32 %v823_v34, %v1421_v4 }
 0x2ee   :  { %v684_v59 = vpop.xlane.xlu0 %683 }
 0x2ef   :  { %v709_v24 = vadd.f32 %v1426_v40, %v684_v59 }
 0x2f1   :  { %v792_v32 = vrot.slane %v709_v24, %v791_v7 }
 0x2f2   :  { %v670_v37 = vpop.xlane.xlu1 %669 }
 0x2f3   :  { %v702_v42 = vadd.f32 %v1426_v40, %v670_v37  ;;  %v830_v37 = vadd.s32 4294967184, %v1418_v38 }
 0x2f4   :  { %v672_v3 = vpop.xlane.xlu0 %671 }
 0x2f5   :  { %v703_v49 = vadd.f32 %v1426_v40, %v672_v3  ;;  %v743_v45 = vrot.slane %v702_v42, %v742_v36  ;;  %v833_v38 = vsub.s32 %v830_v37, %v1421_v4 }
 0x2f7   :  { %v750_v58 = vrot.slane %v703_v49, %v749_v48  ;;  %v745_v14 = vsel %vm744_vm0, %v743_v45, %v738_v54 }
 0x2f8   :  { %v686_v16 = vpop.xlane.xlu1 %685 }
 0x2f9   :  { %v752_v11 = vsel %vm751_vm1, %v750_v58, %v745_v14  ;;  %v710_v28 = vadd.f32 %v1426_v40, %v686_v16 }
 0x2fa   :  { %v688_v43 = vpop.xlane.xlu0 %687 }
 0x2fb   :  { %v711_v31 = vadd.f32 %v1426_v40, %v688_v43  ;;  %v799_v43 = vrot.slane %v710_v28, %v798_v57 }
 0x2fc   :  { %v674_v6 = vpop.xlane.xlu1 %673 }
 0x2fd   :  { %v704_v53 = vadd.f32 %v1426_v40, %v674_v6  ;;  %v806_v49 = vrot.slane %v711_v31, %v805_v15 }
 0x2ff   :  { %v757_v19 = vrot.slane %v704_v53, %v756_v52  ;;  %v840_v53 = vsub.s32 %v837_v39, %v1421_v4 }
 0x300   :  { %v676_v61 = vpop.xlane.xlu0 %675  ;;  %v690_v63 = vpop.xlane.xlu1 %689 }
 0x301   :  { %v705_v62 = vadd.f32 %v1426_v40, %v676_v61  ;;  %v759_v13 = vsel %vm758_vm2, %v757_v19, %v752_v11  ;;  %v712_v59 = vadd.f32 %v1426_v40, %v690_v63 }
 0x303   :  { %v764_v12 = vrot.slane %v705_v62, %v763_v51  ;;  %v813_v45 = vrot.slane %v712_v59, %v812_v18 }
 0x304   :  { %v678_v35 = vpop.xlane.xlu1 %677  ;;  %v680_v27 = vpop.xlane.xlu0 %679 }
 0x305   :  { %v706_v60 = vadd.f32 %v1426_v40, %v678_v35  ;;  %v707_v17 = vadd.f32 %v1426_v40, %v680_v27  ;;  %v766_v41 = vsel %vm765_vm3, %v764_v12, %v759_v13 }
 0x307   :  { %v771_v21 = vrot.slane %v706_v60, %v770_v9  ;;  %v778_v25 = vrot.slane %v707_v17, %v777_v22 }
 0x308   :  { %v682_v26 = vpop.xlane.xlu1 %681  ;;  %v692_v29 = vpop.xlane.xlu0 %691 }
 0x309   :  { %v773_v30 = vsel %vm772_vm4, %v771_v21, %v766_v41  ;;  %v708_v33 = vadd.f32 %v1426_v40, %v682_v26  ;;  %v713_v36 = vadd.f32 %v1426_v40, %v692_v29 }
 0x30a   :  { %v780_v16 = vsel %vm779_vm5, %v778_v25, %v773_v30 }
 0x30b   :  { %v785_v3 = vrot.slane %v708_v33, %v784_v23  ;;  %v820_v55 = vrot.slane %v713_v36, %v819_v2 }
 0x30c   :  { %v694_v42 = vpop.xlane.xlu1 %693  ;;  %v696_v50 = vpop.xlane.xlu0 %695 }
 0x30d   :  { %v787_v44 = vsel %vm786_vm6, %v785_v3, %v780_v16  ;;  %v714_v48 = vadd.f32 %v1426_v40, %v694_v42  ;;  %v715_v47 = vadd.f32 %v1426_v40, %v696_v50 }
 0x30e   :  { %v794_v6 = vsel %vm793_vm7, %v792_v32, %v787_v44 }
 0x30f   :  { %v801_v52 = vsel %vm800_vm8, %v799_v43, %v794_v6  ;;  %v827_v46 = vrot.slane %v714_v48, %v826_v8  ;;  %v834_v63 = vrot.slane %v715_v47, %v833_v38 }
 0x310   :  { %v808_v54 = vsel %vm807_vm9, %v806_v49, %v801_v52  ;;  %v698_v56 = vpop.xlane.xlu1 %697 }
 0x311   :  { %v815_v58 = vsel %vm814_vm10, %v813_v45, %v808_v54  ;;  %v716_v51 = vadd.f32 %v1426_v40, %v698_v56 }
 0x312   :  { %v822_v61 = vsel %vm821_vm11, %v820_v55, %v815_v58 }
 0x313   :  { %v829_v1 = vsel %vm828_vm12, %v827_v46, %v822_v61  ;;  %v841_v14 = vrot.slane %v716_v51, %v840_v53 }
 0x314   :  { %v836_v19 = vsel %vm835_vm13, %v834_v63, %v829_v1 }
 0x315   :  { %v843_v4 = vsel %vm842_vm14, %v841_v14, %v836_v19 }
 0x316   :  { %845 = vst [vmem:[#allocation8] sm:$0x1] %v843_v4 }
 0x317   :  { %1112 = shalt.err (!%p1109_p6)
}
 0x318   :  { %s1113_s7 = scalar_lea.hbm %s1498_s5, 16 }
 0x319   :  { %p1114_p7 = scmp.ne.s32.totalorder %s1498_s5, %s1113_s7  ;;  %p1117_p8 = scmp.lt.u32.totalorder %s1113_s7, %s1498_s5 }
 0x31b   :  { %p1119_p9 = pnand %p1117_p8, %p1114_p7 }
 0x31d   :  { %1122 = shalt.err (!%p1119_p9)
}
 0x31e   :  { %855 = dma.vmem_to_hbm [thread:$0]  %s853_s27, 16, %s1498_s5, [#allocation5]  }
 0x31f   :  { %1127 = dma.done.wait [#allocation5], 16  }
 0x320   :  { %1128 = vsyncadd [#allocation5], 4294967280 }
 0x321   :  { %859 = vsyncpa [#allocation4], 1 }
 0x322   :  { %860 = vsyncpa [#allocation7], 1 }
 0x323   :  { %861 = vsyncpa [#allocation5], 1 }

</bundles_post_ra>
